<compile_context>
chip_gen: v7x
topology: tpu7x:2x2x1
jax: 0.10.0
libtpu: 0.0.40
codegen_flags: <defaults>
</compile_context>

<pallas_src>
import jax
import jax.numpy as jnp
from jax import lax
from jax.experimental import pallas as pl
from jax.experimental.pallas import tpu as pltpu

_LANE = 128


# ----------------------------- kernels --------------------------------------


def _normalize_kernel(d_ref, o_ref):
    # d_ref / o_ref: (TR, D) row tile of the direction parameter.
    d = d_ref[...].astype(jnp.float32)
    # L2 norm along dim=1 (lane axis); rsqrt is a single EUP op (off the VALU
    # path).  Zero-norm rows -> inf/nan, matching the PyTorch reference.
    inv_norm = lax.rsqrt(jnp.sum(d * d, axis=1, keepdims=True))
    o_ref[...] = (d * inv_norm).astype(o_ref.dtype)


def _broadcast_kernel(dhat_ref, o_ref):
    # dhat_ref: (1, D) pre-normalized direction, VMEM-resident across steps.
    # o_ref:    (TB, D) output tile -- pure sublane broadcast + unmasked store.
    o_ref[...] = jnp.broadcast_to(dhat_ref[...], o_ref.shape).astype(o_ref.dtype)


# --------------------------- tiling helpers ----------------------------------


def _vmem_limit_bytes():
    """Generation-aware scoped-VMEM request: <= half physical, capped at 48 MiB
    (v5e/v6e: 128 MiB physical -> 48 MiB; v7x: 64 MiB per TC -> 32 MiB)."""
    try:
        cap = pltpu.get_tpu_info().vmem_capacity_bytes
    except Exception:
        cap = 64 << 20  # conservative: v7x per-TensorCore physical VMEM
    return min(cap // 2, 48 << 20)


def _round_down(x, m):
    return max(m, (x // m) * m)


def _pick_row_tile(n_rows, bytes_per_row, out_dtype, per_step_budget,
                   max_row_tile=None, min_steps=4):
    """Largest sublane-aligned row tile whose per-step (input+output) bytes fit
    the budget, while keeping >= min_steps grid steps when rows permit so the
    'parallel' axis can shard across v7x's two TensorCores."""
    itemsize = jnp.dtype(out_dtype).itemsize
    pack = max(8, 32 // itemsize)  # sublane pack: 8 (f32), 16 (bf16), 32 (i8)
    tb = _round_down(per_step_budget // max(1, bytes_per_row), pack)
    if max_row_tile is not None:
        tb = min(tb, _round_down(max_row_tile, pack))
    if n_rows >= min_steps * pack:
        tb = min(tb, _round_down(n_rows // min_steps, pack))
    elif n_rows >= 2 * pack:
        tb = min(tb, _round_down(n_rows // 2, pack))
    if n_rows <= tb:
        return n_rows  # full extent is always a legal block shape
    return tb


# ------------------------------ wrapper --------------------------------------


def fixed_direction_forward(d, z=None, materialize=True, max_batch_tile=None):
    """Pallas implementation of FixedDirection.forward.

    d: (R, D) learned direction parameter (R is usually 1).
    z: optional (B, D) latent points; only its shape matters (torch .expand()).
    materialize: if False and R == 1, return the (1, D) normalized direction
        instead of materializing the (B, D) broadcast (mirrors the .expand()
        view and skips the B*D HBM write entirely).
    max_batch_tile: optional cap on the row tile (testing the tiled path).
    """
    R, D = d.shape
    out_dtype = d.dtype  # torch .expand() preserves the parameter dtype
    limit = _vmem_limit_bytes()
    per_step_budget = limit // 3  # double-buffered (in+out) stays <= ~2/3 of limit

    def cparams(sem):
        return pltpu.CompilerParams(dimension_semantics=sem,
                                    vmem_limit_bytes=limit)

    def normalize(d_arr, max_tile=None):
        r, dd = d_arr.shape
        # Input AND output tiles are row-tiled + double-buffered here, so both
        # dtypes are folded into the per-row byte count (v5e scoped-VMEM fix).
        bytes_per_row = dd * (jnp.dtype(d_arr.dtype).itemsize
                              + jnp.dtype(out_dtype).itemsize)
        tr = _pick_row_tile(r, bytes_per_row, out_dtype, per_step_budget, max_tile)
        return pl.pallas_call(
            _normalize_kernel,
            out_shape=jax.ShapeDtypeStruct((r, dd), out_dtype),
            grid=(pl.cdiv(r, tr),),
            in_specs=[pl.BlockSpec((tr, dd), lambda i: (i, 0))],
            out_specs=pl.BlockSpec((tr, dd), lambda i: (i, 0)),
            compiler_params=cparams(("parallel",)),
        )(d_arr)

    if z is None:
        return normalize(d, max_batch_tile)

    assert z.shape[1:] == d.shape[1:], "mismatched dimensions"
    B = z.shape[0]
    assert R in (1, B), "cannot expand leading dim"

    # Lane-dense output: pad the feature dim to a multiple of 128 so output
    # stores are unmasked vst (the big lever for a write-bound kernel); zero
    # padding leaves each row's L2 norm unchanged.
    D_pad = pl.cdiv(D, _LANE) * _LANE
    d_in = d if D_pad == D else jnp.pad(d, ((0, 0), (0, D_pad - D)))

    if R == B:
        # Every latent already has its own direction row: out == normalize(d).
        out = normalize(d_in, max_batch_tile)
        return out if D_pad == D else out[:, :D]

    # R == 1: normalize once (tiny single-block call, hoisted out of the
    # steady-state loop), then stream the sublane broadcast into (B, D).
    d_hat = normalize(d_in)
    if not materialize:
        return d_hat if D_pad == D else d_hat[:, :D]

    bytes_per_row = D_pad * jnp.dtype(out_dtype).itemsize  # only the output is tiled
    TB = _pick_row_tile(B, bytes_per_row, out_dtype, per_step_budget, max_batch_tile)
    out = pl.pallas_call(
        _broadcast_kernel,
        out_shape=jax.ShapeDtypeStruct((B, D_pad), out_dtype),
        grid=(pl.cdiv(B, TB),),
        in_specs=[pl.BlockSpec((1, D_pad), lambda i: (0, 0))],   # VMEM-resident
        out_specs=pl.BlockSpec((TB, D_pad), lambda i: (i, 0)),
        compiler_params=cparams(("parallel",)),
    )(d_hat)
    # TODO(synk): when D % 128 != 0, a consumer-fused slice (or an end-to-end
    # lane-dense slab layout) would avoid this extra wrapper-side slice pass.
    return out if D_pad == D else out[:, :D]


# ------------------------------ reference ------------------------------------


def _reference(d, z=None):
    d_hat = d / jnp.linalg.norm(d, axis=1, keepdims=True)
    if z is not None:
        d_hat = jnp.broadcast_to(d_hat, z.shape)
    return d_hat


if __name__ == "__main__":
    key = jax.random.PRNGKey(0)
    k_d, k_z, k_z2, k_d2, k_z3, k_db, k_zb = jax.random.split(key, 7)

    batch = 2
    latent_dim = 128  # lane-aligned feature dim

    # Parameter init matches nn.Parameter(torch.randn(shape) * 0.1), shape=(1, latent_dim)
    d_param = jax.random.normal(k_d, (1, latent_dim), dtype=jnp.float32) * 0.1
    z = jax.random.normal(k_z, (batch, latent_dim), dtype=jnp.float32)

    # Forward with z (materialized broadcast) and without z.
    out = jax.block_until_ready(fixed_direction_forward(d_param, z))
    out_nz = jax.block_until_ready(fixed_direction_forward(d_param, None))

    # Multi-step pipelined/tiled broadcast path (grid > 1).
    z_big = jax.random.normal(k_z2, (32, latent_dim), dtype=jnp.float32)
    out_big = jax.block_until_ready(
        fixed_direction_forward(d_param, z_big, max_batch_tile=8))

    # Unaligned feature dim -> exercises the lane-padding (lane-dense) path.
    d_odd = jax.random.normal(k_d2, (1, 100), dtype=jnp.float32) * 0.1
    z_odd = jax.random.normal(k_z3, (16, 100), dtype=jnp.float32)
    out_odd = jax.block_until_ready(fixed_direction_forward(d_odd, z_odd))

    # R == B path (per-latent direction rows).
    d_rb = jax.random.normal(k_db, (16, latent_dim), dtype=jnp.float32) * 0.1
    z_rb = jax.random.normal(k_zb, (16, latent_dim), dtype=jnp.float32)
    out_rb = jax.block_until_ready(fixed_direction_forward(d_rb, z_rb))

    # Non-materializing fast path (view semantics of torch .expand()).
    out_lazy = jax.block_until_ready(
        fixed_direction_forward(d_param, z_big, materialize=False))

    ref = _reference(d_param, z)
    ref_nz = _reference(d_param, None)
    ref_big = _reference(d_param, z_big)
    ref_odd = _reference(d_odd, z_odd)
    ref_rb = _reference(d_rb, z_rb)

    assert out.shape == (batch, latent_dim)
    assert out_nz.shape == (1, latent_dim)
    assert out_big.shape == (32, latent_dim)
    assert out_odd.shape == (16, 100)
    assert out_rb.shape == (16, latent_dim)
    assert out_lazy.shape == (1, latent_dim)
    assert jnp.allclose(out, ref, atol=1e-5, rtol=1e-5)
    assert jnp.allclose(out_nz, ref_nz, atol=1e-5, rtol=1e-5)
    assert jnp.allclose(out_big, ref_big, atol=1e-5, rtol=1e-5)
    assert jnp.allclose(out_odd, ref_odd, atol=1e-5, rtol=1e-5)
    assert jnp.allclose(out_rb, ref_rb, atol=1e-5, rtol=1e-5)
    assert jnp.allclose(jnp.broadcast_to(out_lazy, z_big.shape), ref_big,
                        atol=1e-5, rtol=1e-5)

    print("KERNEL_OK")
</pallas_src>

<mosaic_0001>
module attributes {stable_mosaic.version = 11 : i64} {
  func.func @_normalize_kernel(%arg0: i32, %arg1: memref<1x128xf32, #tpu.memory_space<vmem>>, %arg2: memref<1x128xf32, #tpu.memory_space<vmem>>) attributes {dimension_semantics = [#tpu.dimension_semantics<parallel>], iteration_bounds = array<i64: 1>, scalar_prefetch = 0 : i64, scratch_operands = 0 : i64, tpu.core_type = #tpu.core_type<tc>, window_params = [{transform_indices = @transform_0, window_bounds = array<i64: 1, 128>}, {transform_indices = @transform_1, window_bounds = array<i64: 1, 128>}]} {
    %c0 = arith.constant 0 : index
    %c0_0 = arith.constant 0 : index
    %0 = vector.load %arg1[%c0, %c0_0] : memref<1x128xf32, #tpu.memory_space<vmem>>, vector<1x128xf32>
    %1 = arith.mulf %0, %0 : vector<1x128xf32>
    %cst = arith.constant dense<0.000000e+00> : vector<1xf32>
    %2 = vector.multi_reduction <add>, %1, %cst [1] : vector<1x128xf32> to vector<1xf32>
    %3 = vector.shape_cast %2 : vector<1xf32> to vector<1x1xf32>
    %4 = math.rsqrt %3 : vector<1x1xf32>
    %5 = vector.broadcast %4 : vector<1x1xf32> to vector<1x128xf32>
    %6 = arith.mulf %0, %5 : vector<1x128xf32>
    %c0_1 = arith.constant 0 : index
    %c0_2 = arith.constant 0 : index
    %7 = vector.load %arg2[%c0_1, %c0_2] : memref<1x128xf32, #tpu.memory_space<vmem>>, vector<1x128xf32>
    tpu.vector_store %arg2[%c0_1, %c0_2], %6 {strides = array<i32>} : memref<1x128xf32, #tpu.memory_space<vmem>>, vector<1x128xf32>,
    return
  }
  func.func @transform_0(%arg0: i32) -> (i32, i32) {
    %c0_i32 = arith.constant 0 : i32
    %c0_i32_0 = arith.constant 0 : i32
    return %arg0, %c0_i32 : i32, i32
  }
  func.func @transform_1(%arg0: i32) -> (i32, i32) {
    %c0_i32 = arith.constant 0 : i32
    %c0_i32_0 = arith.constant 0 : i32
    return %arg0, %c0_i32 : i32, i32
  }
}

</mosaic_0001>

<bundles_post_ra>
// kernel: tpu_custom_call.1
= control target key start
LH: loop header
LB: loop body
LE: loop exit
PB: predicated region body
PF: predicated region fallthrough
CT: control target
= control target key end

     0   :  { %6 = vsyncpa [#allocation3], 0  ;;  %s133_s0 = inlined_call_operand.hbm [shape: f32[1,128], index: 0, kind: input, shape index: {}]   ;;  %s134_s1 = inlined_call_operand.hbm [shape: f32[1,128], index: 1, kind: output, shape index: {}]  }
   0x1   :  { %7 = vsyncpa [#allocation4], 0  ;;  %s97_s6 = smov [#allocation2]   ;;  %s49_s10 = scalar_lea.hbm %s133_s0, 16 }
   0x2   :  { %s14_s7 = sshll.u32 %s97_s6, 4  ;;  %p50_p0 = scmp.ne.s32.totalorder %s133_s0, %s49_s10  ;;  %s15_s7 = int_to_ptr.vmem [resolvable:$true] %s14_s7 }
   0x3   :  { %p53_p1 = scmp.lt.u32.totalorder %s49_s10, %s133_s0 }
   0x5   :  { %p55_p2 = pnand %p53_p1, %p50_p0 }
   0x7   :  { %58 = shalt.err (!%p55_p2)
}
   0x8   :  { %s59_s15 = scalar_lea.vmem %s15_s7, 16  ;;  %s63_s16 = scalar_lea.vmem %s15_s7, 32 }
   0x9   :  { %p60_p3 = scmp.ne.s32.totalorder %s15_s7, %s59_s15  ;;  %p64_p4 = scmp.lt.s32.totalorder %s15_s7, %s15_s7 }
   0xa   :  { %p65_p5 = scmp.lt.s32.totalorder %s63_s16, %s59_s15 }
   0xc   :  { %p66_p6 = por %p65_p5, %p64_p4 }
   0xe   :  { %p67_p7 = pnand %p66_p6, %p60_p3 }
  0x10   :  { %70 = shalt.err (!%p67_p7)
}
  0x11   :  { %17 = dma.hbm_to_vmem [thread:$0]  %s133_s0, 16, %s15_s7, [#allocation3]  }
  0x12   :  { %93 = dma.done.wait [#allocation3], 16  }
  0x13   :  { %94 = vsyncadd [#allocation3], 4294967280  ;;  %v21_v0 = vld [vmem:[#allocation2] sm:$0x1]  ;;  %vm23_vm0 = vcmask 1040384   ;;  %s98_s19 = smov [#allocation5]  }
  0x14   :  { %v22_v1 = vmul.f32 %v21_v0, %v21_v0  ;;  %s36_s20 = sshll.u32 %s98_s19, 4  ;;  %s37_s20 = int_to_ptr.vmem [resolvable:$true] %s36_s20 }
  0x15   :  { %s71_s21 = scalar_lea.vmem %s37_s20, 16  ;;  %s75_s22 = scalar_lea.vmem %s37_s20, 32 }
  0x16   :  { %v24_v2 = vsel %vm23_vm0, %v22_v1, 0.0  ;;  %p72_p8 = scmp.ne.s32.totalorder %s37_s20, %s71_s21  ;;  %p76_p9 = scmp.lt.s32.totalorder %s37_s20, %s37_s20 }
  0x17   :  { %25 = vadd.xlane.f32.xlu0 %v24_v2  ;;  %p77_p10 = scmp.lt.s32.totalorder %s75_s22, %s71_s21 }
  0x19   :  { %p78_p11 = por %p77_p10, %p76_p9 }
  0x1b   :  { %p79_p12 = pnand %p78_p11, %p72_p8 }
  0xa4   :  { %v26_v3 = vpop.xlane.xlu0 %25 }
  0xa5   :  { %47 = vrsqrt.f32 %v26_v3 }
  0xaf   :  { %v48_v4 = vpop.eup %47 }
  0xb0   :  { %v28_v5 = vmul.f32 %v48_v4, %v21_v0 }
  0xb2   :  { %29 = vst [vmem:[#allocation5] sm:$0x1] %v28_v5 }
  0xb3   :  { %82 = shalt.err (!%p79_p12)
}
  0xb4   :  { %s83_s24 = scalar_lea.hbm %s134_s1, 16 }
  0xb5   :  { %p84_p13 = scmp.ne.s32.totalorder %s134_s1, %s83_s24  ;;  %p87_p0 = scmp.lt.u32.totalorder %s83_s24, %s134_s1 }
  0xb7   :  { %p89_p1 = pnand %p87_p0, %p84_p13 }
  0xb9   :  { %92 = shalt.err (!%p89_p1)
}
  0xba   :  { %39 = dma.vmem_to_hbm [thread:$0]  %s37_s20, 16, %s134_s1, [#allocation4]  }
  0xbb   :  { %95 = dma.done.wait [#allocation4], 16  }
  0xbc   :  { %96 = vsyncadd [#allocation4], 4294967280 }
  0xbd   :  { %43 = vsyncpa [#allocation3], 1 }
  0xbe   :  { %44 = vsyncpa [#allocation4], 1 }

</bundles_post_ra>
